<compile_context>
chip_gen: v5e
topology: v5e:2x2
jax: 0.10.0
libtpu: 0.0.40
codegen_flags: <defaults>
</compile_context>

<pallas_src>
import functools

import jax
import jax.numpy as jnp
from jax.experimental import pallas as pl
from jax.experimental.pallas import tpu as pltpu


# ---------------------------------------------------------------------------
# Parameter preparation (done ONCE, outside the per-step path).
# ---------------------------------------------------------------------------

def prepare_esn_params(w_in, w_rec, w_fb, dtype=jnp.bfloat16):
    """Pre-transpose the three nn.Linear weights ([out, in] layout) to [in, out]
    and cast them to the MXU-native dtype (default bf16)."""
    return (jnp.transpose(w_in).astype(dtype),
            jnp.transpose(w_rec).astype(dtype),
            jnp.transpose(w_fb).astype(dtype))


def prepare_esn_seq_params(w_in, w_rec, w_fb, dtype=jnp.bfloat16):
    """For the multi-step kernel: the non-recurrent weights ([x|fb]) are fused into one
    matrix (their input is streamed per step); the recurrent weight stays separate
    (its input is produced in-kernel)."""
    w_xfb = jnp.concatenate([jnp.transpose(w_in), jnp.transpose(w_fb)], axis=0).astype(dtype)
    w_rec_t = jnp.transpose(w_rec).astype(dtype)
    return w_xfb, w_rec_t


def _pick_tn(out_dim, k_total, weight_bytes, budget_bytes=16 << 20):
    """Largest output-tile width whose double-buffered weight tiles fit the budget."""
    if out_dim % 128 != 0:
        # TODO(synk): pad out_dim to a multiple of 128 for lane-dense (unmasked) stores.
        return out_dim
    for tn in (1024, 512, 256, 128):
        if out_dim % tn == 0 and 2 * k_total * tn * weight_bytes <= budget_bytes:
            return tn
    return 128


def _vmem_limit(est_bytes):
    # Generous headroom over the raw estimate (VMEM blocks pad to (8,128) tiles, plus
    # Mosaic internal scratch); never below the 32 MiB default-ish floor, capped well
    # under any generation's physical VMEM minus nothing useful.
    return int(min(max(2 * est_bytes + (8 << 20), 32 << 20), 100 << 20))


# ---------------------------------------------------------------------------
# Single-step kernel (matches ESN.forward exactly).
# ---------------------------------------------------------------------------

def _esn_step_kernel(leak_rate, u_ref, x_ref, oldy_ref, fb_ref,
                     win_ref, wrec_ref, wfb_ref, new_u_ref, y_ref):
    wdt = win_ref.dtype
    # Three MXU dots (K is tiny; the step is HBM-bound on streaming W), f32 accumulate.
    pre = jnp.dot(x_ref[...].astype(wdt), win_ref[...],
                  preferred_element_type=jnp.float32)
    pre = pre + jnp.dot(oldy_ref[...].astype(wdt), wrec_ref[...],
                        preferred_element_type=jnp.float32)
    pre = pre + jnp.dot(fb_ref[...].astype(wdt), wfb_ref[...],
                        preferred_element_type=jnp.float32)
    u = u_ref[...].astype(jnp.float32)
    new_u_ref[...] = (leak_rate * u + (1.0 - leak_rate) * pre).astype(new_u_ref.dtype)
    # y = tanh(incoming u), exactly as the reference (EUP op, off the VALU critical path).
    y_ref[...] = jnp.tanh(u).astype(y_ref.dtype)


@functools.partial(jax.jit, static_argnames=("leak_rate",))
def esn_forward(u, x, old_y, fb, w_in_t, w_rec_t, w_fb_t, *, leak_rate):
    """One ESN step.

    u:      [B, output_dim]  current reservoir state (f32)
    x:      [B, input_dim]
    old_y:  [B, output_dim]
    fb:     [B, feedback_dim]
    w_*_t:  pre-transposed weights from prepare_esn_params (bf16 by default)

    Returns (y, new_u), both [B, output_dim] f32.
    """
    B, out_dim = u.shape
    in_dim = x.shape[1]
    fb_dim = fb.shape[1]
    k_total = in_dim + out_dim + fb_dim
    wbytes = jnp.dtype(w_in_t.dtype).itemsize

    tn = _pick_tn(out_dim, k_total, wbytes)
    grid = (out_dim // tn,)
    kernel = functools.partial(_esn_step_kernel, float(leak_rate))

    est = (2 * k_total * tn * wbytes       # double-buffered weight tiles
           + 2 * B * tn * 4                # u tiles
           + 2 * B * k_total * 4           # activations (conservatively x2)
           + 2 * 2 * B * tn * 4)           # outputs

    new_u, y = pl.pallas_call(
        kernel,
        out_shape=(
            jax.ShapeDtypeStruct((B, out_dim), jnp.float32),  # new_u
            jax.ShapeDtypeStruct((B, out_dim), jnp.float32),  # y
        ),
        grid_spec=pltpu.PrefetchScalarGridSpec(
            num_scalar_prefetch=0,
            grid=grid,
            in_specs=[
                pl.BlockSpec((B, tn), lambda j: (0, j)),         # u        (tiled on N)
                pl.BlockSpec((B, in_dim), lambda j: (0, 0)),     # x        (resident)
                pl.BlockSpec((B, out_dim), lambda j: (0, 0)),    # old_y    (resident)
                pl.BlockSpec((B, fb_dim), lambda j: (0, 0)),     # fb       (resident)
                pl.BlockSpec((in_dim, tn), lambda j: (0, j)),    # W_in^T   (tiled on N)
                pl.BlockSpec((out_dim, tn), lambda j: (0, j)),   # W_rec^T  (tiled on N)
                pl.BlockSpec((fb_dim, tn), lambda j: (0, j)),    # W_fb^T   (tiled on N)
            ],
            out_specs=[
                pl.BlockSpec((B, tn), lambda j: (0, j)),         # new_u
                pl.BlockSpec((B, tn), lambda j: (0, j)),         # y
            ],
        ),
        compiler_params=pltpu.CompilerParams(
            dimension_semantics=("parallel",),     # independent N tiles -> 2-TC split
            vmem_limit_bytes=_vmem_limit(est),
        ),
    )(u, x, old_y, fb, w_in_t, w_rec_t, w_fb_t)
    return y, new_u


# ---------------------------------------------------------------------------
# Multi-step (sequence) kernel: T recurrent steps in one pallas_call, weights and
# (u, y) state resident in VMEM across the whole sequence.
# ---------------------------------------------------------------------------

def _esn_seq_kernel(leak_rate, u0_ref, y0_ref, xfb_ref, w_xfb_ref, w_rec_ref,
                    y_seq_ref, u_ref, y_state):
    t = pl.program_id(1)

    @pl.when(t == 0)
    def _():
        # u_ref's block index is constant over t, so it stays VMEM-resident and acts
        # as the live u state (no extra scratch buffer needed).
        u_ref[...] = u0_ref[...].astype(jnp.float32)
        y_state[...] = y0_ref[...].astype(jnp.float32)

    u_prev = u_ref[...]
    y_prev = y_state[...]
    wdt = w_xfb_ref.dtype

    pre = jnp.dot(xfb_ref[0], w_xfb_ref[...], preferred_element_type=jnp.float32)
    pre = pre + jnp.dot(y_prev.astype(wdt), w_rec_ref[...],
                        preferred_element_type=jnp.float32)

    y_new = jnp.tanh(u_prev)  # reference semantics: tanh of the *incoming* u
    u_ref[...] = leak_rate * u_prev + (1.0 - leak_rate) * pre
    y_state[...] = y_new
    y_seq_ref[0] = y_new.astype(y_seq_ref.dtype)


@functools.partial(jax.jit, static_argnames=("leak_rate",))
def esn_forward_sequence(u0, y0, x_seq, fb_seq, w_xfb, w_rec_t, *, leak_rate):
    """Run T ESN steps in a single kernel.

    u0:     [B, output_dim]    initial reservoir state
    y0:     [B, output_dim]    initial old_y
    x_seq:  [T, B, input_dim]
    fb_seq: [T, B, feedback_dim]
    w_xfb:  [input_dim + feedback_dim, output_dim]   (prepare_esn_seq_params)
    w_rec_t:[output_dim, output_dim]

    Returns (y_seq [T, B, output_dim], u_final [B, output_dim]).
    TODO(synk): rollout assumes old_y at step t is the y returned at step t-1 (the
                reference forward takes old_y explicitly each call).
    """
    T, B, _ = x_seq.shape
    out_dim = u0.shape[1]
    wdt = w_xfb.dtype
    wbytes = jnp.dtype(wdt).itemsize
    xfb = jnp.concatenate([x_seq, fb_seq], axis=-1).astype(wdt)  # once per sequence
    k_xfb = xfb.shape[-1]

    # v7x megacore: split independent batch halves across the 2 TCs when each shard
    # keeps >= 8 sublane rows; no-op (n_b = 1) at small B and on 1-TC chips.
    n_b = 2 if (B % 2 == 0 and B >= 16) else 1
    bt = B // n_b

    kernel = functools.partial(_esn_seq_kernel, float(leak_rate))

    est = (2 * (k_xfb * out_dim + out_dim * out_dim) * wbytes  # resident weights (x2)
           + 2 * 2 * bt * out_dim * 4                          # u0, y0
           + 2 * bt * k_xfb * wbytes                           # per-step [x|fb] slice
           + 2 * 2 * bt * out_dim * 4                          # y_seq, u outputs
           + bt * out_dim * 4)                                 # y_state scratch

    y_seq, u_final = pl.pallas_call(
        kernel,
        out_shape=(
            jax.ShapeDtypeStruct((T, B, out_dim), jnp.float32),
            jax.ShapeDtypeStruct((B, out_dim), jnp.float32),
        ),
        grid_spec=pltpu.PrefetchScalarGridSpec(
            num_scalar_prefetch=0,
            grid=(n_b, T),
            in_specs=[
                pl.BlockSpec((bt, out_dim), lambda b, t: (b, 0)),        # u0
                pl.BlockSpec((bt, out_dim), lambda b, t: (b, 0)),        # y0
                pl.BlockSpec((1, bt, k_xfb), lambda b, t: (t, b, 0)),    # [x|fb] per-step
                pl.BlockSpec((k_xfb, out_dim), lambda b, t: (0, 0)),     # W_xfb  (resident)
                pl.BlockSpec((out_dim, out_dim), lambda b, t: (0, 0)),   # W_rec  (resident)
            ],
            out_specs=[
                pl.BlockSpec((1, bt, out_dim), lambda b, t: (t, b, 0)),  # y per step
                pl.BlockSpec((bt, out_dim), lambda b, t: (b, 0)),        # u (state/final)
            ],
            scratch_shapes=[
                pltpu.VMEM((bt, out_dim), jnp.float32),  # y state, lives across the grid
            ],
        ),
        compiler_params=pltpu.CompilerParams(
            dimension_semantics=("parallel", "arbitrary"),  # batch shards || , T sequential
            vmem_limit_bytes=_vmem_limit(est),
        ),
    )(u0, y0, xfb, w_xfb, w_rec_t)
    return y_seq, u_final


# ---------------------------------------------------------------------------
# Pure-JAX references (f32 weights; the kernels use bf16 weights -> relaxed tolerances).
# ---------------------------------------------------------------------------

def _reference_step(u, x, old_y, fb, w_in, w_rec, w_fb, leak_rate):
    pre = x @ w_in.T + old_y @ w_rec.T + fb @ w_fb.T
    new_u = leak_rate * u + (1.0 - leak_rate) * pre
    y = jnp.tanh(u)
    return y, new_u


def _reference_sequence(u0, y0, x_seq, fb_seq, w_in, w_rec, w_fb, leak_rate):
    u, y_prev = u0, y0
    ys = []
    for t in range(x_seq.shape[0]):
        y, u = _reference_step(u, x_seq[t], y_prev, fb_seq[t], w_in, w_rec, w_fb, leak_rate)
        ys.append(y)
        y_prev = y
    return jnp.stack(ys), u


# ---------------------------------------------------------------------------
# Test.
# ---------------------------------------------------------------------------

if __name__ == "__main__":
    B = 2
    input_dim = 16
    output_dim = 32
    feedback_dim = 8
    T = 8
    leak_rate = 0.5

    key = jax.random.PRNGKey(0)
    ks = jax.random.split(key, 9)

    # nn.Linear weight layout: [out, in].
    w_in = jax.random.normal(ks[0], (output_dim, input_dim), jnp.float32) * 0.1
    w_rec = jax.random.normal(ks[1], (output_dim, output_dim), jnp.float32) * 0.1
    w_fb = jax.random.normal(ks[2], (output_dim, feedback_dim), jnp.float32) * 0.1

    # Inputs.
    u = jax.random.normal(ks[3], (B, output_dim), jnp.float32)
    x = jax.random.normal(ks[4], (B, input_dim), jnp.float32)
    old_y = jax.random.normal(ks[5], (B, output_dim), jnp.float32)
    fb = jax.random.normal(ks[6], (B, feedback_dim), jnp.float32)
    x_seq = jax.random.normal(ks[7], (T, B, input_dim), jnp.float32)
    fb_seq = jax.random.normal(ks[8], (T, B, feedback_dim), jnp.float32)

    # One-time (per-model) weight preparation, hoisted out of the step path (bf16).
    w_in_t, w_rec_t, w_fb_t = prepare_esn_params(w_in, w_rec, w_fb)
    w_xfb, w_rec_t_seq = prepare_esn_seq_params(w_in, w_rec, w_fb)

    # --- single step (matches ESN.forward) ---
    y, new_u = esn_forward(u, x, old_y, fb, w_in_t, w_rec_t, w_fb_t, leak_rate=leak_rate)
    jax.block_until_ready((y, new_u))
    y_ref, new_u_ref = _reference_step(u, x, old_y, fb, w_in, w_rec, w_fb, leak_rate)
    assert jnp.allclose(y, y_ref, atol=1e-4), "single-step y mismatch vs reference"
    assert jnp.allclose(new_u, new_u_ref, atol=2e-2), "single-step new_u mismatch vs reference"

    # --- T recurrent steps in one kernel (weights/state resident in VMEM) ---
    y_seq, u_final = esn_forward_sequence(u, old_y, x_seq, fb_seq, w_xfb, w_rec_t_seq,
                                          leak_rate=leak_rate)
    jax.block_until_ready((y_seq, u_final))
    y_seq_ref, u_final_ref = _reference_sequence(u, old_y, x_seq, fb_seq,
                                                 w_in, w_rec, w_fb, leak_rate)
    assert jnp.allclose(y_seq, y_seq_ref, atol=5e-2), "sequence y mismatch vs reference"
    assert jnp.allclose(u_final, u_final_ref, atol=5e-2), "sequence u mismatch vs reference"

    print("KERNEL_OK")
</pallas_src>

<mosaic_0001>
module attributes {stable_mosaic.version = 11 : i64} {
  func.func @_esn_step_kernel(%arg0: i32, %arg1: memref<2x32xf32, #tpu.memory_space<vmem>>, %arg2: memref<2x16xf32, #tpu.memory_space<vmem>>, %arg3: memref<2x32xf32, #tpu.memory_space<vmem>>, %arg4: memref<2x8xf32, #tpu.memory_space<vmem>>, %arg5: memref<16x32xbf16, #tpu.memory_space<vmem>>, %arg6: memref<32x32xbf16, #tpu.memory_space<vmem>>, %arg7: memref<8x32xbf16, #tpu.memory_space<vmem>>, %arg8: memref<2x32xf32, #tpu.memory_space<vmem>>, %arg9: memref<2x32xf32, #tpu.memory_space<vmem>>) attributes {dimension_semantics = [#tpu.dimension_semantics<parallel>], iteration_bounds = array<i64: 1>, scalar_prefetch = 0 : i64, scratch_operands = 0 : i64, tpu.core_type = #tpu.core_type<tc>, window_params = [{transform_indices = @transform_0, window_bounds = array<i64: 2, 32>}, {pipeline_mode = #tpu.pipeline_mode<synchronous>, transform_indices = @transform_1, window_bounds = array<i64: 2, 16>}, {pipeline_mode = #tpu.pipeline_mode<synchronous>, transform_indices = @transform_2, window_bounds = array<i64: 2, 32>}, {pipeline_mode = #tpu.pipeline_mode<synchronous>, transform_indices = @transform_3, window_bounds = array<i64: 2, 8>}, {transform_indices = @transform_4, window_bounds = array<i64: 16, 32>}, {transform_indices = @transform_5, window_bounds = array<i64: 32, 32>}, {transform_indices = @transform_6, window_bounds = array<i64: 8, 32>}, {transform_indices = @transform_7, window_bounds = array<i64: 2, 32>}, {transform_indices = @transform_8, window_bounds = array<i64: 2, 32>}]} {
    %c0 = arith.constant 0 : index
    %c0_0 = arith.constant 0 : index
    %0 = vector.load %arg2[%c0, %c0_0] : memref<2x16xf32, #tpu.memory_space<vmem>>, vector<2x16xf32>
    %1 = arith.truncf %0 : vector<2x16xf32> to vector<2x16xbf16>
    %c0_1 = arith.constant 0 : index
    %c0_2 = arith.constant 0 : index
    %2 = vector.load %arg5[%c0_1, %c0_2] : memref<16x32xbf16, #tpu.memory_space<vmem>>, vector<16x32xbf16>
    %cst = arith.constant dense<0.000000e+00> : vector<2x32xf32>
    %3 = tpu.matmul %1, %2, %cst {dimension_numbers = #tpu.dot_dimension_numbers<[1], [0], [0], [1], [0, 0, 1, 1], [], []>} : vector<2x16xbf16>, vector<16x32xbf16>, vector<2x32xf32> -> vector<2x32xf32>
    %c0_3 = arith.constant 0 : index
    %c0_4 = arith.constant 0 : index
    %4 = vector.load %arg3[%c0_3, %c0_4] : memref<2x32xf32, #tpu.memory_space<vmem>>, vector<2x32xf32>
    %5 = arith.truncf %4 : vector<2x32xf32> to vector<2x32xbf16>
    %c0_5 = arith.constant 0 : index
    %c0_6 = arith.constant 0 : index
    %6 = vector.load %arg6[%c0_5, %c0_6] : memref<32x32xbf16, #tpu.memory_space<vmem>>, vector<32x32xbf16>
    %cst_7 = arith.constant dense<0.000000e+00> : vector<2x32xf32>
    %7 = tpu.matmul %5, %6, %cst_7 {dimension_numbers = #tpu.dot_dimension_numbers<[1], [0], [0], [1], [0, 0, 1, 1], [], []>} : vector<2x32xbf16>, vector<32x32xbf16>, vector<2x32xf32> -> vector<2x32xf32>
    %8 = arith.addf %3, %7 : vector<2x32xf32>
    %c0_8 = arith.constant 0 : index
    %c0_9 = arith.constant 0 : index
    %9 = vector.load %arg4[%c0_8, %c0_9] : memref<2x8xf32, #tpu.memory_space<vmem>>, vector<2x8xf32>
    %10 = arith.truncf %9 : vector<2x8xf32> to vector<2x8xbf16>
    %c0_10 = arith.constant 0 : index
    %c0_11 = arith.constant 0 : index
    %11 = vector.load %arg7[%c0_10, %c0_11] : memref<8x32xbf16, #tpu.memory_space<vmem>>, vector<8x32xbf16>
    %cst_12 = arith.constant dense<0.000000e+00> : vector<2x32xf32>
    %12 = tpu.matmul %10, %11, %cst_12 {dimension_numbers = #tpu.dot_dimension_numbers<[1], [0], [0], [1], [0, 0, 1, 1], [], []>} : vector<2x8xbf16>, vector<8x32xbf16>, vector<2x32xf32> -> vector<2x32xf32>
    %13 = arith.addf %8, %12 : vector<2x32xf32>
    %c0_13 = arith.constant 0 : index
    %c0_14 = arith.constant 0 : index
    %14 = vector.load %arg1[%c0_13, %c0_14] : memref<2x32xf32, #tpu.memory_space<vmem>>, vector<2x32xf32>
    %cst_15 = arith.constant 5.000000e-01 : f32
    %15 = vector.broadcast %cst_15 : f32 to vector<2x32xf32>
    %16 = arith.mulf %15, %14 : vector<2x32xf32>
    %cst_16 = arith.constant 5.000000e-01 : f32
    %17 = vector.broadcast %cst_16 : f32 to vector<2x32xf32>
    %18 = arith.mulf %17, %13 : vector<2x32xf32>
    %19 = arith.addf %16, %18 : vector<2x32xf32>
    %c0_17 = arith.constant 0 : index
    %c0_18 = arith.constant 0 : index
    %20 = vector.load %arg8[%c0_17, %c0_18] : memref<2x32xf32, #tpu.memory_space<vmem>>, vector<2x32xf32>
    tpu.vector_store %arg8[%c0_17, %c0_18], %19 {strides = array<i32>} : memref<2x32xf32, #tpu.memory_space<vmem>>, vector<2x32xf32>,
    %21 = math.tanh %14 : vector<2x32xf32>
    %c0_19 = arith.constant 0 : index
    %c0_20 = arith.constant 0 : index
    %22 = vector.load %arg9[%c0_19, %c0_20] : memref<2x32xf32, #tpu.memory_space<vmem>>, vector<2x32xf32>
    tpu.vector_store %arg9[%c0_19, %c0_20], %21 {strides = array<i32>} : memref<2x32xf32, #tpu.memory_space<vmem>>, vector<2x32xf32>,
    return
  }
  func.func @transform_0(%arg0: i32) -> (i32, i32) {
    %c0_i32 = arith.constant 0 : i32
    %c0_i32_0 = arith.constant 0 : i32
    return %c0_i32, %arg0 : i32, i32
  }
  func.func @transform_1(%arg0: i32) -> (i32, i32) {
    %c0_i32 = arith.constant 0 : i32
    %c0_i32_0 = arith.constant 0 : i32
    %c0_i32_1 = arith.constant 0 : i32
    return %c0_i32, %c0_i32_0 : i32, i32
  }
  func.func @transform_2(%arg0: i32) -> (i32, i32) {
    %c0_i32 = arith.constant 0 : i32
    %c0_i32_0 = arith.constant 0 : i32
    %c0_i32_1 = arith.constant 0 : i32
    return %c0_i32, %c0_i32_0 : i32, i32
  }
  func.func @transform_3(%arg0: i32) -> (i32, i32) {
    %c0_i32 = arith.constant 0 : i32
    %c0_i32_0 = arith.constant 0 : i32
    %c0_i32_1 = arith.constant 0 : i32
    return %c0_i32, %c0_i32_0 : i32, i32
  }
  func.func @transform_4(%arg0: i32) -> (i32, i32) {
    %c0_i32 = arith.constant 0 : i32
    %c0_i32_0 = arith.constant 0 : i32
    return %c0_i32, %arg0 : i32, i32
  }
  func.func @transform_5(%arg0: i32) -> (i32, i32) {
    %c0_i32 = arith.constant 0 : i32
    %c0_i32_0 = arith.constant 0 : i32
    return %c0_i32, %arg0 : i32, i32
  }
  func.func @transform_6(%arg0: i32) -> (i32, i32) {
    %c0_i32 = arith.constant 0 : i32
    %c0_i32_0 = arith.constant 0 : i32
    return %c0_i32, %arg0 : i32, i32
  }
  func.func @transform_7(%arg0: i32) -> (i32, i32) {
    %c0_i32 = arith.constant 0 : i32
    %c0_i32_0 = arith.constant 0 : i32
    return %c0_i32, %arg0 : i32, i32
  }
  func.func @transform_8(%arg0: i32) -> (i32, i32) {
    %c0_i32 = arith.constant 0 : i32
    %c0_i32_0 = arith.constant 0 : i32
    return %c0_i32, %arg0 : i32, i32
  }
}

</mosaic_0001>

<bundles_post_ra>
// kernel: esn_forward.1
= control target key start
LH: loop header
LB: loop body
LE: loop exit
PB: predicated region body
PF: predicated region fallthrough
CT: control target
= control target key end

     0   :  { %14 = vsyncpa [#allocation3], 0  ;;  %s566_s0 = inlined_call_operand.hbm [shape: f32[2,32], index: 0, kind: input, shape index: {}]   ;;  %s567_s1 = inlined_call_operand.hbm [shape: f32[2,16], index: 1, kind: input, shape index: {}]   ;;  %s568_s2 = inlined_call_operand.hbm [shape: f32[2,32], index: 2, kind: input, shape index: {}]   ;;  %s569_s3 = inlined_call_operand.hbm [shape: f32[2,8], index: 3, kind: input, shape index: {}]   ;;  %s570_s4 = inlined_call_operand.hbm [shape: bf16[16,32], index: 4, kind: input, shape index: {}]   ;;  %s571_s5 = inlined_call_operand.hbm [shape: bf16[32,32], index: 5, kind: input, shape index: {}]   ;;  %s572_s6 = inlined_call_operand.vmem [shape: bf16[8,32], index: 6, kind: input, shape index: {}]   ;;  %s573_s7 = inlined_call_operand.hbm [shape: f32[2,32], index: 7, kind: output, shape index: {0}]   ;;  %s574_s8 = inlined_call_operand.hbm [shape: f32[2,32], index: 8, kind: output, shape index: {1}]  }
   0x1   :  { %15 = vsyncpa [#allocation6], 0 }
   0x2   :  { %16 = vsyncpa [#allocation9], 0 }
   0x3   :  { %17 = vsyncpa [#allocation12], 0 }
   0x4   :  { %18 = vsyncpa [#allocation4], 0  ;;  %s36_s29 = sshll.u32 %s567_s1, 4  ;;  %s37_s29 = int_to_ptr.hbm [resolvable:$true] %s36_s29 }
   0x5   :  { %19 = vsyncpa [#allocation15], 0  ;;  %s482_s30 = smov [#allocation5]   ;;  %s58_s12 = sshll.u32 %s569_s3, 4  ;;  %s59_s12 = int_to_ptr.hbm [resolvable:$true] %s58_s12 }
   0x6   :  { %s38_s9 = sshll.u32 %s482_s30, 4  ;;  %s483_s13 = smov [#allocation8]   ;;  %s39_s9 = int_to_ptr.vmem [resolvable:$true] %s38_s9 }
   0x7   :  { %41 = dma.hbm_to_vmem [thread:$0]  %s37_s29, 32, %s39_s9, [#allocation6]  }
   0x8   :  { %s60_s14 = sshll.u32 %s483_s13, 4  ;;  %s25_s17 = sshll.u32 %s566_s0, 4  ;;  %s61_s14 = int_to_ptr.vmem [resolvable:$true] %s60_s14  ;;  %s26_s17 = int_to_ptr.hbm [resolvable:$true] %s25_s17 }
   0x9   :  { %63 = dma.hbm_to_vmem [thread:$0]  %s59_s12, 32, %s61_s14, [#allocation9]  }
   0xa   :  { %s47_s19 = sshll.u32 %s568_s2, 4  ;;  %s484_s20 = smov [#allocation2]   ;;  %s48_s19 = int_to_ptr.hbm [resolvable:$true] %s47_s19 }
   0xb   :  { %s27_s21 = sshll.u32 %s484_s20, 4  ;;  %s485_s3 = smov [#allocation7]   ;;  %s28_s21 = int_to_ptr.vmem [resolvable:$true] %s27_s21 }
   0xc   :  { %30 = dma.hbm_to_vmem [thread:$0]  %s26_s17, 32, %s28_s21, [#allocation3]  }
   0xd   :  { %s49_s22 = sshll.u32 %s485_s3, 4  ;;  %s68_s25 = sshll.u32 %s570_s4, 4  ;;  %s50_s22 = int_to_ptr.vmem [resolvable:$true] %s49_s22  ;;  %s69_s25 = int_to_ptr.hbm [resolvable:$true] %s68_s25 }
   0xe   :  { %52 = dma.hbm_to_vmem [thread:$0]  %s48_s19, 32, %s50_s22, [#allocation6]  }
   0xf   :  { %s486_s0 = smov [#allocation10]   ;;  %s81_s2 = sshll.u32 %s571_s5, 4  ;;  %s82_s2 = int_to_ptr.hbm [resolvable:$true] %s81_s2 }
  0x10   :  { %s70_s26 = sshll.u32 %s486_s0, 4  ;;  %s487_s29 = smov 64   ;;  %s71_s26 = int_to_ptr.vmem [resolvable:$true] %s70_s26 }
  0x11   :  { %s488_s30 = smov 4   ;;  %s489_s9 = smov [#allocation11]  }
  0x12   :  { %76 = dma.hbm_to_vmem [thread:$0]  %s69_s25, 128, %s71_s26, [#allocation9], %s487_s29, %s487_s29, %s488_s30  }
  0x13   :  { %s83_s10 = sshll.u32 %s489_s9, 4  ;;  %s84_s10 = int_to_ptr.vmem [resolvable:$true] %s83_s10 }
  0x14   :  { %89 = dma.hbm_to_vmem [thread:$0]  %s82_s2, 256, %s84_s10, [#allocation12], %s487_s29, %s487_s29, %s488_s30  }
  0x15   :  { %470 = dma.done.wait [#allocation3], 32  }
  0x16   :  { %471 = vsyncadd [#allocation3], 4294967264 }
  0x17   :  { %472 = dma.done.wait [#allocation6], 64  }
  0x18   :  { %473 = vsyncadd [#allocation6], 4294967232 }
  0x19   :  { %474 = dma.done.wait [#allocation9], 160  }
  0x1a   :  { %475 = vsyncadd [#allocation9], 4294967136 }
  0x1b   :  { %476 = dma.done.wait [#allocation12], 256  }
  0x1c   :  { %477 = vsyncadd [#allocation12], 4294967040  ;;  %vm186_vm0 = vcmask 1043456   ;;  %v181_v0 = vld [vmem:[%s572_s6] sm:$0xf]  ;;  %v263_v2 = vld [vmem:[#allocation10] sm:$0xff] }
  0x1d   :  { %v265_v1 = vld [vmem:[#allocation11 + $0x8] sm:$0xff]  ;;  %v188_v3 = vsel %vm186_vm0, %v181_v0, 0  ;;  %v179_v4 = vld [vmem:[#allocation8] sm:$0x3]  ;;  %v117_v5 = vld [vmem:[#allocation5] sm:$0x3]  ;;  %173 = vmatpush.bf16.msra.mxu1 %v263_v2 }
  0x1e   :  { %197 = vmatpush.bf16.msra.mxu2 %v188_v3  ;;  %149 = vmatpush.bf16.msra.mxu0 %v265_v1  ;;  %v180_v6 = vpack.c.bf16 %v179_v4, %v179_v4  ;;  %vm182_vm1 = vcmask 64512   ;;  %v118_v7 = vpack.c.bf16 %v117_v5, %v117_v5  ;;  %v264_v8 = vld [vmem:[#allocation11] sm:$0xff]  ;;  %v121_v9 = vld [vmem:[#allocation7] sm:$0x3]  ;;  %vm162_vm2 = vcmask 130048   ;;  %s490_s5 = smov [#allocation14]  }
  0x1f   :  { %v122_v10 = vpack.c.bf16 %v121_v9, %v121_v9  ;;  %vm139_vm3 = vcmask 261120   ;;  %v204_v11 = vld [vmem:[#allocation2] sm:$0x3]  ;;  %s228_s6 = sshll.u32 %s490_s5, 4  ;;  %s230_s14 = sshll.u32 %s574_s8, 4  ;;  %vm208_vm4 = vcmask 254976   ;;  %s229_s6 = int_to_ptr.vmem [resolvable:$true] %s228_s6  ;;  %s231_s14 = int_to_ptr.hbm [resolvable:$true] %s230_s14 }
  0x20   :  { %261 = vmatmul.msk.bf16.vlgmr.msra.gmra.mxu1 %vm162_vm2, %v118_v7  ;;  %276 = vtanh.f32 %v204_v11  ;;  %v205_v18 = vmul.f32 0.5, %v204_v11  ;;  %s491_s15 = smov [#allocation13]   ;;  %s219_s18 = sshll.u32 %s573_s7, 4  ;;  %s220_s18 = int_to_ptr.hbm [resolvable:$true] %s219_s18 }
  0x21   :  { %262 = vmatmul.msk.bf16.vlgmr.msra.gmra.mxu2 %vm182_vm1, %v180_v6  ;;  %s217_s16 = sshll.u32 %s491_s15, 4  ;;  %s218_s16 = int_to_ptr.vmem [resolvable:$true] %s217_s16 }
  0x22   :  { %150 = vmatpush.bf16.msra.mxu0 %v264_v8 }
  0x25   :  { %256 = vmatmul.msk.bf16.vlgmr.msra.gmra.mxu0 %vm139_vm3, %v122_v10 }
  0x26   :  { %v277_v12 = vpop.eup %276 }
  0x27   :  { %211 = vst.msk [vmem:[#allocation14] sm:$0x3] %vm208_vm4, %v277_v12 }
  0x28   :  { %233 = dma.vmem_to_hbm [thread:$0]  %s229_s6, 32, %s231_s14, [#allocation15]  }
  0x9d   :  { %v175_v13 = vpop.f32.mrf.mxu1 }
  0xa2   :  { %v152_v14 = vpop.f32.mrf.mxu0 }
  0xa3   :  { %v176_v15 = vadd.f32 %v175_v13, %v152_v14 }
  0xa4   :  { %v199_v16 = vpop.f32.mrf.mxu2 }
  0xa5   :  { %v203_v17 = vadd.f32 %v199_v16, %v176_v15  ;;  %v177_v20 = vpop.f32.mrf.mxu1 }
  0xa7   :  { %v206_v19 = vmul.f32 0.5, %v203_v17 }
  0xa9   :  { %v207_v21 = vadd.f32 %v206_v19, %v205_v18 }
  0xaa   :  { %v154_v22 = vpop.f32.mrf.mxu0 }
  0xab   :  { %209 = vst.msk [vmem:[#allocation13] sm:$0x3] %vm208_vm4, %v207_v21 }
  0xac   :  { %v201_v23 = vpop.f32.mrf.mxu2  ;;  %222 = dma.vmem_to_hbm [thread:$0]  %s218_s16, 32, %s220_s18, [#allocation4]  }
  0xad   :  { %478 = dma.done.wait [#allocation4], 32  }
  0xae   :  { %479 = vsyncadd [#allocation4], 4294967264 }
  0xaf   :  { %480 = dma.done.wait [#allocation15], 32  }
  0xb0   :  { %481 = vsyncadd [#allocation15], 4294967264 }
  0xb1   :  { %242 = vsyncpa [#allocation3], 1 }
  0xb2   :  { %243 = vsyncpa [#allocation6], 1 }
  0xb3   :  { %244 = vsyncpa [#allocation9], 1 }
  0xb4   :  { %245 = vsyncpa [#allocation12], 1 }
  0xb5   :  { %246 = vsyncpa [#allocation4], 1 }
  0xb6   :  { %247 = vsyncpa [#allocation15], 1 }

</bundles_post_ra>
